<compile_context>
chip_gen: v6e
topology: v6e:2x2x1
jax: 0.10.0
libtpu: 0.0.40
codegen_flags: <defaults>
</compile_context>

<pallas_src>
import functools

import jax
import jax.numpy as jnp
from jax.experimental import pallas as pl
from jax.experimental.pallas import tpu as pltpu

DECAY = 0.2
THRESH = 0.3
BETA = 0.07

_LANE = 128
_SUBLANE = 8
# ~1 MiB f32 per input block: ~85% of HBM roofline on v6e measurements while
# keeping the double-buffered working set (~12-14 MiB) far below every
# generation's VMEM (64 MiB on v7x).
_TARGET_BLOCK_BYTES = 1 << 20
_VMEM_LIMIT = 32 * 1024 * 1024


def _round_up(x, m):
    return (x + m - 1) // m * m


def _choose_blocks(rows, cols):
    """Pick a lane-dense, sublane-full (tm, tn) tile of ~_TARGET_BLOCK_BYTES."""
    target_elems = _TARGET_BLOCK_BYTES // 4
    if cols % _LANE == 0:
        tn = min(cols, max(_LANE, (target_elems // _SUBLANE) // _LANE * _LANE))
    else:
        # Non-128-multiple minor dim: block dim == full array dim (allowed).
        # Avoids any padding/slicing copies in the wrapper.
        tn = cols
    tm_cap = max(_SUBLANE, max(1, target_elems // tn) // _SUBLANE * _SUBLANE)
    tm = min(rows, tm_cap)
    # If the whole problem fits in a single block, split the row axis so the
    # grid has >=2 "parallel" blocks (lets v7x's two TensorCores share work).
    if tm == rows and tn == cols and rows >= 2 * _SUBLANE:
        tm = _round_up((rows + 1) // 2, _SUBLANE)
    return tm, tn


# ----------------------------------------------------------------------------
# Kernels (all purely elementwise on (tm, tn) lane-dense tiles).
# ----------------------------------------------------------------------------

def _lsnn_first_kernel(x_ref, spike_ref, mem_ref, a_ref):
    # is_first step: mem = 0, a = 0  => never read the state streams.
    x = x_ref[...]
    spike = (x > THRESH).astype(jnp.float32)
    spike_ref[...] = spike
    mem_ref[...] = x * DECAY * (1.0 - spike)
    a_ref[...] = spike                       # exp(-1/rho) * 0 + spike


def _lsnn_step_kernel(x_ref, mem_ref, a_ref, rho_ref,
                      spike_ref, mem_out_ref, a_out_ref):
    # rho_ref: (tm, 1) per-row exp(-1/rho_clamped) column (lane broadcast).
    x = x_ref[...]
    a = a_ref[...]
    mem = mem_ref[...] + x
    spike = (mem > THRESH + BETA * a).astype(jnp.float32)  # strict '>' (gt)
    spike_ref[...] = spike
    mem_out_ref[...] = mem * DECAY * (1.0 - spike)
    a_out_ref[...] = rho_ref[...] * a + spike


def _lsnn_seq_kernel(*refs, init_zero):
    # Fused T-step recurrence. Grid = (row_tiles, col_tiles, T), T innermost
    # ("arbitrary"); mem/a output tiles keep the same block index across T, so
    # they stay resident in VMEM and are written back to HBM once per tile.
    if init_zero:
        x_ref, rho_ref, spike_ref, mem_ref, a_ref = refs
    else:
        x_ref, mem0_ref, a0_ref, rho_ref, spike_ref, mem_ref, a_ref = refs

    t = pl.program_id(2)

    @pl.when(t == 0)
    def _():
        if init_zero:
            mem_ref[...] = jnp.zeros_like(mem_ref)
            a_ref[...] = jnp.zeros_like(a_ref)
        else:
            mem_ref[...] = mem0_ref[...]
            a_ref[...] = a0_ref[...]

    x = x_ref[0]                              # (tm, tn) slice of (1, tm, tn)
    a = a_ref[...]
    mem = mem_ref[...] + x
    spike = (mem > THRESH + BETA * a).astype(jnp.float32)
    spike_ref[0] = spike
    mem_ref[...] = mem * DECAY * (1.0 - spike)
    a_ref[...] = rho_ref[...] * a + spike


# ----------------------------------------------------------------------------
# Single-step wrappers (module `forward(input, is_first)` parity).
# ----------------------------------------------------------------------------

def _rho_rows(rho, N, C):
    # Per-row (n*c) factor exp(-1/rho_c) as a (N*C, 1) column.
    col = jnp.exp(-1.0 / rho.reshape(C)).astype(jnp.float32)
    return jnp.broadcast_to(col[None, :], (N, C)).reshape(N * C, 1)


@jax.jit
def _forward_first(x, rho):
    N, C, H, W = x.shape
    rows, cols = N * C, H * W
    rho_used = jnp.clip(rho, 0.64, 2.3)       # rho.data.clamp_(0.64, 2.3)
    x2 = x.reshape(rows, cols)

    tm, tn = _choose_blocks(rows, cols)
    grid = (pl.cdiv(rows, tm), pl.cdiv(cols, tn))
    spec = pl.BlockSpec((tm, tn), lambda i, j: (i, j))

    spike2, mem2, a2 = pl.pallas_call(
        _lsnn_first_kernel,
        out_shape=tuple(jax.ShapeDtypeStruct((rows, cols), jnp.float32)
                        for _ in range(3)),
        grid_spec=pltpu.PrefetchScalarGridSpec(
            num_scalar_prefetch=0, grid=grid,
            in_specs=[spec], out_specs=[spec, spec, spec]),
        compiler_params=pltpu.CompilerParams(
            dimension_semantics=("parallel", "parallel"),
            vmem_limit_bytes=_VMEM_LIMIT),
        cost_estimate=pl.CostEstimate(flops=5 * rows * cols, transcendentals=0,
                                      bytes_accessed=4 * rows * cols * 4),
    )(x2)

    shp = (N, C, H, W)
    return spike2.reshape(shp), mem2.reshape(shp), a2.reshape(shp), rho_used


@functools.partial(jax.jit, donate_argnums=(1, 2))
def _forward_step(x, mem, a, rho):
    N, C, H, W = x.shape
    rows, cols = N * C, H * W
    x2 = x.reshape(rows, cols)
    mem2 = mem.reshape(rows, cols)
    a2 = a.reshape(rows, cols)
    rho_rows = _rho_rows(rho, N, C)

    tm, tn = _choose_blocks(rows, cols)
    grid = (pl.cdiv(rows, tm), pl.cdiv(cols, tn))
    data_spec = pl.BlockSpec((tm, tn), lambda i, j: (i, j))
    rho_spec = pl.BlockSpec((tm, 1), lambda i, j: (i, 0))

    spike2, mem_o, a_o = pl.pallas_call(
        _lsnn_step_kernel,
        out_shape=tuple(jax.ShapeDtypeStruct((rows, cols), jnp.float32)
                        for _ in range(3)),
        grid_spec=pltpu.PrefetchScalarGridSpec(
            num_scalar_prefetch=0, grid=grid,
            in_specs=[data_spec, data_spec, data_spec, rho_spec],
            out_specs=[data_spec, data_spec, data_spec]),
        # mem / a state updated in place (buffers donated at the jit boundary).
        input_output_aliases={1: 1, 2: 2},
        compiler_params=pltpu.CompilerParams(
            dimension_semantics=("parallel", "parallel"),
            vmem_limit_bytes=_VMEM_LIMIT),
        cost_estimate=pl.CostEstimate(flops=7 * rows * cols, transcendentals=0,
                                      bytes_accessed=6 * rows * cols * 4),
    )(x2, mem2, a2, rho_rows)

    shp = (N, C, H, W)
    return spike2.reshape(shp), mem_o.reshape(shp), a_o.reshape(shp), rho


def snn_lsnn23_spike_forward(x, mem, a, rho, is_first):
    """One step of SNN_2d_lsnn23_spike. Returns (spike, mem, a, rho_used)."""
    if is_first:
        return _forward_first(x, rho)
    return _forward_step(x, mem, a, rho)


# ----------------------------------------------------------------------------
# Fused multi-timestep wrapper (call-site optimization): one pallas_call runs
# T steps with mem/a resident in VMEM; only x streamed in, spike streamed out.
# ----------------------------------------------------------------------------

def _seq_pallas(x3, mem2, a2, rho_rows, *, init_zero):
    T, rows, cols = x3.shape
    tm, tn = _choose_blocks(rows, cols)
    grid = (pl.cdiv(rows, tm), pl.cdiv(cols, tn), T)

    x_spec = pl.BlockSpec((1, tm, tn), lambda i, j, t: (t, i, j))
    st_spec = pl.BlockSpec((tm, tn), lambda i, j, t: (i, j))
    rho_spec = pl.BlockSpec((tm, 1), lambda i, j, t: (i, 0))

    if init_zero:
        in_specs = [x_spec, rho_spec]
        inputs = (x3, rho_rows)
        aliases = {}
        n_state_reads = 0
    else:
        in_specs = [x_spec, st_spec, st_spec, rho_spec]
        inputs = (x3, mem2, a2, rho_rows)
        aliases = {1: 1, 2: 2}                 # in-place mem/a state update
        n_state_reads = 2

    bytes_acc = (2 * T + n_state_reads + 2) * rows * cols * 4

    return pl.pallas_call(
        functools.partial(_lsnn_seq_kernel, init_zero=init_zero),
        out_shape=(
            jax.ShapeDtypeStruct((T, rows, cols), jnp.float32),   # spikes
            jax.ShapeDtypeStruct((rows, cols), jnp.float32),      # mem
            jax.ShapeDtypeStruct((rows, cols), jnp.float32),      # a
        ),
        grid_spec=pltpu.PrefetchScalarGridSpec(
            num_scalar_prefetch=0, grid=grid,
            in_specs=in_specs,
            out_specs=[x_spec, st_spec, st_spec]),
        input_output_aliases=aliases,
        compiler_params=pltpu.CompilerParams(
            dimension_semantics=("parallel", "parallel", "arbitrary"),
            vmem_limit_bytes=_VMEM_LIMIT),
        cost_estimate=pl.CostEstimate(flops=7 * T * rows * cols,
                                      transcendentals=0,
                                      bytes_accessed=bytes_acc),
    )(*inputs)


@jax.jit
def _forward_seq_first(x_seq, rho):
    T, N, C, H, W = x_seq.shape
    rows, cols = N * C, H * W
    rho_used = jnp.clip(rho, 0.64, 2.3)
    spike3, mem2, a2 = _seq_pallas(x_seq.reshape(T, rows, cols), None, None,
                                   _rho_rows(rho_used, N, C), init_zero=True)
    return (spike3.reshape(T, N, C, H, W), mem2.reshape(N, C, H, W),
            a2.reshape(N, C, H, W), rho_used)


@functools.partial(jax.jit, donate_argnums=(1, 2))
def _forward_seq_step(x_seq, mem, a, rho):
    T, N, C, H, W = x_seq.shape
    rows, cols = N * C, H * W
    spike3, mem2, a2 = _seq_pallas(x_seq.reshape(T, rows, cols),
                                   mem.reshape(rows, cols),
                                   a.reshape(rows, cols),
                                   _rho_rows(rho, N, C), init_zero=False)
    return (spike3.reshape(T, N, C, H, W), mem2.reshape(N, C, H, W),
            a2.reshape(N, C, H, W), rho)


def snn_lsnn23_spike_forward_seq(x_seq, mem, a, rho, is_first):
    """Run T consecutive steps fused in one kernel. x_seq: (T, N, C, H, W)."""
    if is_first:
        return _forward_seq_first(x_seq, rho)
    return _forward_seq_step(x_seq, mem, a, rho)


# ----------------------------------------------------------------------------
# Pure-JAX reference + test
# ----------------------------------------------------------------------------

def _reference_step(x, mem, a, rho, is_first):
    if is_first:
        mem = jnp.zeros_like(x)
        a = jnp.zeros_like(x)
        rho = jnp.clip(rho, 0.64, 2.3)
    A = THRESH + BETA * a
    mem = mem + x
    spike = (mem > A).astype(jnp.float32)
    mem = mem * DECAY * (1.0 - spike)
    a = jnp.exp(-1.0 / rho) * a + spike          # rho (C,1,1) broadcasts
    return spike, mem, a, rho


if __name__ == "__main__":
    key = jax.random.PRNGKey(0)
    ok = True

    # One 128-aligned config and one misaligned config (exercises the
    # no-pad / ragged-block path: rows=15, H*W=196).
    for (N, C, H, W, T) in [(2, 4, 16, 16, 4), (3, 5, 14, 14, 3)]:
        key, k_rho, k_x = jax.random.split(key, 3)
        rho0 = (0.87 * jnp.ones((C, 1, 1), jnp.float32)
                + 0.05 * jax.random.normal(k_rho, (C, 1, 1), jnp.float32))
        x_seq = jax.random.normal(k_x, (T, N, C, H, W), jnp.float32)

        # Reference recurrence.
        mem_r = jnp.zeros((N, C, H, W), jnp.float32)
        a_r = jnp.zeros((N, C, H, W), jnp.float32)
        rho_r = rho0
        spikes_r = []
        for t in range(T):
            s, mem_r, a_r, rho_r = _reference_step(x_seq[t], mem_r, a_r,
                                                   rho_r, t == 0)
            spikes_r.append(s)
        spikes_r = jnp.stack(spikes_r)

        # Single-step kernel API (module forward parity).
        mem_k = jnp.zeros((N, C, H, W), jnp.float32)
        a_k = jnp.zeros((N, C, H, W), jnp.float32)
        rho_k = rho0
        spikes_k = []
        for t in range(T):
            s, mem_k, a_k, rho_k = snn_lsnn23_spike_forward(
                x_seq[t], mem_k, a_k, rho_k, t == 0)
            spikes_k.append(s)
        spikes_k = jnp.stack(spikes_k)
        jax.block_until_ready((spikes_k, mem_k, a_k))
        ok &= bool(jnp.allclose(spikes_k, spikes_r, atol=1e-6))
        ok &= bool(jnp.allclose(mem_k, mem_r, atol=1e-5))
        ok &= bool(jnp.allclose(a_k, a_r, atol=1e-5))

        # Fused multi-timestep kernel: first chunk with is_first=True, then
        # continue from the returned state (exercises both seq code paths).
        t0 = max(1, T // 2)
        s_a, mem_s, a_s, rho_s = snn_lsnn23_spike_forward_seq(
            x_seq[:t0], None, None, rho0, True)
        s_b, mem_s, a_s, rho_s = snn_lsnn23_spike_forward_seq(
            x_seq[t0:], mem_s, a_s, rho_s, False)
        spikes_s = jnp.concatenate([s_a, s_b], axis=0)
        jax.block_until_ready((spikes_s, mem_s, a_s))
        ok &= bool(jnp.allclose(spikes_s, spikes_r, atol=1e-6))
        ok &= bool(jnp.allclose(mem_s, mem_r, atol=1e-5))
        ok &= bool(jnp.allclose(a_s, a_r, atol=1e-5))

    print("KERNEL_OK" if ok else "MISMATCH")
</pallas_src>

<mosaic_0001>
module attributes {stable_mosaic.version = 11 : i64} {
  func.func @_lsnn_first_kernel(%arg0: i32, %arg1: i32, %arg2: memref<8x256xf32, #tpu.memory_space<vmem>>, %arg3: memref<8x256xf32, #tpu.memory_space<vmem>>, %arg4: memref<8x256xf32, #tpu.memory_space<vmem>>, %arg5: memref<8x256xf32, #tpu.memory_space<vmem>>) attributes {dimension_semantics = [#tpu.dimension_semantics<parallel>, #tpu.dimension_semantics<parallel>], iteration_bounds = array<i64: 1, 1>, scalar_prefetch = 0 : i64, scratch_operands = 0 : i64, tpu.core_type = #tpu.core_type<tc>, window_params = [{transform_indices = @transform_0, window_bounds = array<i64: 8, 256>}, {transform_indices = @transform_1, window_bounds = array<i64: 8, 256>}, {transform_indices = @transform_2, window_bounds = array<i64: 8, 256>}, {transform_indices = @transform_3, window_bounds = array<i64: 8, 256>}]} {
    %c0 = arith.constant 0 : index
    %c0_0 = arith.constant 0 : index
    %0 = vector.load %arg2[%c0, %c0_0] : memref<8x256xf32, #tpu.memory_space<vmem>>, vector<8x256xf32>
    %cst = arith.constant 3.000000e-01 : f32
    %1 = vector.broadcast %cst : f32 to vector<8x256xf32>
    %2 = arith.cmpf ogt, %0, %1 : vector<8x256xf32>
    %3 = arith.extui %2 : vector<8x256xi1> to vector<8x256xi32>
    %4 = arith.sitofp %3 : vector<8x256xi32> to vector<8x256xf32>
    %c0_1 = arith.constant 0 : index
    %c0_2 = arith.constant 0 : index
    %5 = vector.load %arg3[%c0_1, %c0_2] : memref<8x256xf32, #tpu.memory_space<vmem>>, vector<8x256xf32>
    tpu.vector_store %arg3[%c0_1, %c0_2], %4 {strides = array<i32>} : memref<8x256xf32, #tpu.memory_space<vmem>>, vector<8x256xf32>,
    %cst_3 = arith.constant 2.000000e-01 : f32
    %6 = vector.broadcast %cst_3 : f32 to vector<8x256xf32>
    %7 = arith.mulf %0, %6 : vector<8x256xf32>
    %cst_4 = arith.constant 1.000000e+00 : f32
    %8 = vector.broadcast %cst_4 : f32 to vector<8x256xf32>
    %9 = arith.subf %8, %4 : vector<8x256xf32>
    %10 = arith.mulf %7, %9 : vector<8x256xf32>
    %c0_5 = arith.constant 0 : index
    %c0_6 = arith.constant 0 : index
    %11 = vector.load %arg4[%c0_5, %c0_6] : memref<8x256xf32, #tpu.memory_space<vmem>>, vector<8x256xf32>
    tpu.vector_store %arg4[%c0_5, %c0_6], %10 {strides = array<i32>} : memref<8x256xf32, #tpu.memory_space<vmem>>, vector<8x256xf32>,
    %c0_7 = arith.constant 0 : index
    %c0_8 = arith.constant 0 : index
    %12 = vector.load %arg5[%c0_7, %c0_8] : memref<8x256xf32, #tpu.memory_space<vmem>>, vector<8x256xf32>
    tpu.vector_store %arg5[%c0_7, %c0_8], %4 {strides = array<i32>} : memref<8x256xf32, #tpu.memory_space<vmem>>, vector<8x256xf32>,
    return
  }
  func.func @transform_0(%arg0: i32, %arg1: i32) -> (i32, i32) {
    %c0_i32 = arith.constant 0 : i32
    return %arg0, %arg1 : i32, i32
  }
  func.func @transform_1(%arg0: i32, %arg1: i32) -> (i32, i32) {
    %c0_i32 = arith.constant 0 : i32
    return %arg0, %arg1 : i32, i32
  }
  func.func @transform_2(%arg0: i32, %arg1: i32) -> (i32, i32) {
    %c0_i32 = arith.constant 0 : i32
    return %arg0, %arg1 : i32, i32
  }
  func.func @transform_3(%arg0: i32, %arg1: i32) -> (i32, i32) {
    %c0_i32 = arith.constant 0 : i32
    return %arg0, %arg1 : i32, i32
  }
}

</mosaic_0001>

<bundles_post_ra>
// kernel: _forward_first.1
= control target key start
LH: loop header
LB: loop body
LE: loop exit
PB: predicated region body
PF: predicated region fallthrough
CT: control target
= control target key end

     0   :  { %v46_v3 = vmov 0.0   ;;  %s91_s0 = inlined_call_operand.vmem [shape: f32[8,256], index: 0, kind: input, shape index: {}]   ;;  %s92_s1 = inlined_call_operand.vmem [shape: f32[8,256], index: 1, kind: output, shape index: {0}]   ;;  %s93_s3 = inlined_call_operand.vmem [shape: f32[8,256], index: 3, kind: output, shape index: {2}]   ;;  %s94_s2 = inlined_call_operand.vmem [shape: f32[8,256], index: 2, kind: output, shape index: {1}]  }
   0x1   :  { %v11_v0 = vld [vmem:[%s91_s0] sm:$0xff]  ;;  %v12_v1 = vld [vmem:[%s91_s0 + $0x8] sm:$0xff] }
   0x2   :  { %vm13_vm0 = vcmp.gt.f32.partialorder %v11_v0, 0.3  ;;  %vm14_vm1 = vcmp.gt.f32.partialorder %v12_v1, 0.3  ;;  %v21_v2 = vmul.f32 0.2, %v11_v0 }
   0x3   :  { %v43_v4 = vsel %vm13_vm0, 1.0, %v46_v3  ;;  %v44_v5 = vsel %vm14_vm1, 1.0, %v46_v3  ;;  %v22_v6 = vmul.f32 0.2, %v12_v1 }
   0x4   :  { %19 = vst [vmem:[%s92_s1] sm:$0xff] %v43_v4  ;;  %20 = vst [vmem:[%s92_s1 + $0x8] sm:$0xff] %v44_v5  ;;  %v23_v7 = vsub.f32 1.0, %v43_v4  ;;  %v24_v8 = vsub.f32 1.0, %v44_v5 }
   0x5   :  { %29 = vst [vmem:[%s93_s3] sm:$0xff] %v43_v4  ;;  %30 = vst [vmem:[%s93_s3 + $0x8] sm:$0xff] %v44_v5 }
   0x6   :  { %v25_v9 = vmul.f32 %v23_v7, %v21_v2  ;;  %v26_v10 = vmul.f32 %v24_v8, %v22_v6 }
   0x8   :  { %27 = vst [vmem:[%s94_s2] sm:$0xff] %v25_v9  ;;  %28 = vst [vmem:[%s94_s2 + $0x8] sm:$0xff] %v26_v10 }

</bundles_post_ra>
